<compile_context>
chip_gen: v6e
topology: v6e:2x2x1
jax: 0.10.0
libtpu: 0.0.40
codegen_flags: <defaults>
</compile_context>

<pallas_src>
import functools

import jax
import jax.numpy as jnp
from jax.experimental import pallas as pl
from jax.experimental.pallas import tpu as pltpu


_LANE = 128                 # vreg lane width
_SUB = 8                    # f32 sublane grain
_GRAIN = _SUB * _LANE       # 1024-element (8,128) tile grain
_ROW_TILE = 8192            # rows per grid step -> 4 MiB f32 per input block
_NUM_CORES = 2              # leading "parallel" axis (v7x megacore); fine on 1-TC chips


def _cdiv(a, b):
    return (a + b - 1) // b


# -----------------------------------------------------------------------------
# Pallas kernel: per-core partial sums of sqrt((x - y)^2 + eps)
# -----------------------------------------------------------------------------
def _charbonnier_kernel(x_ref, y_ref, o_ref, acc_ref, *, eps, rows, tr, bpc):
    i = pl.program_id(1)

    @pl.when(i == 0)
    def _init():
        acc_ref[...] = jnp.zeros_like(acc_ref)

    # Global row-block index (unclamped): rows past the true extent (partial
    # last block / fully-masked steps on the spare core) are masked to zero.
    g = pl.program_id(0) * bpc + i
    row0 = g * tr
    local_row = jax.lax.broadcasted_iota(jnp.int32, (tr, _LANE), 0)
    valid = (row0 + local_row) < rows

    d = x_ref[...].astype(jnp.float32) - y_ref[...].astype(jnp.float32)
    v = jnp.sqrt(d * d + jnp.float32(eps))
    v = jnp.where(valid, v, 0.0)

    # Pure VPU adds into the resident (8,128) scratch (no cross-lane reduce).
    acc_ref[...] += jnp.sum(v.reshape(tr // _SUB, _SUB, _LANE), axis=0)

    @pl.when(i == pl.num_programs(1) - 1)
    def _store():
        o_ref[...] = acc_ref[...]


# -----------------------------------------------------------------------------
# Wrapper == CharbonnierLoss.forward (single jit; glue fuses around the call)
# -----------------------------------------------------------------------------
@functools.partial(jax.jit, static_argnames=("eps",))
def charbonnier_loss(x, y, eps=1e-6):
    n = x.size
    x_flat = x.reshape(-1)
    y_flat = y.reshape(-1)

    # (8,128)-aligned bulk through Pallas; <1024-element tail via plain jnp
    # (no pad, no up-cast copies of the operands).
    n_main = (n // _GRAIN) * _GRAIN
    rows = n_main // _LANE      # multiple of 8

    total = jnp.float32(0.0)

    if rows > 0:
        x2 = x_flat[:n_main].reshape(rows, _LANE)
        y2 = y_flat[:n_main].reshape(rows, _LANE)

        # Block is either the full row extent or a fixed 8192-row tile
        # (multiple of 16, so also legal for 16-bit input dtypes).
        tr = min(_ROW_TILE, rows)
        nblocks = _cdiv(rows, tr)
        bpc = _cdiv(nblocks, _NUM_CORES)    # row-blocks per core

        def in_idx(c, i):
            # Clamp so spare steps re-read the last valid block (masked out).
            return (jnp.minimum(c * bpc + i, nblocks - 1), 0)

        kernel = functools.partial(
            _charbonnier_kernel, eps=float(eps), rows=rows, tr=tr, bpc=bpc)

        partials = pl.pallas_call(
            kernel,
            out_shape=jax.ShapeDtypeStruct((_NUM_CORES * _SUB, _LANE),
                                           jnp.float32),
            grid_spec=pltpu.PrefetchScalarGridSpec(
                num_scalar_prefetch=0,
                grid=(_NUM_CORES, bpc),
                in_specs=[
                    pl.BlockSpec((tr, _LANE), in_idx),
                    pl.BlockSpec((tr, _LANE), in_idx),
                ],
                out_specs=pl.BlockSpec((_SUB, _LANE), lambda c, i: (c, 0)),
                scratch_shapes=[pltpu.VMEM((_SUB, _LANE), jnp.float32)],
            ),
            compiler_params=pltpu.CompilerParams(
                dimension_semantics=("parallel", "arbitrary"),
                vmem_limit_bytes=48 * 1024 * 1024,
            ),
        )(x2, y2)
        total = total + jnp.sum(partials)

    if n_main < n:
        xt = x_flat[n_main:].astype(jnp.float32)
        yt = y_flat[n_main:].astype(jnp.float32)
        dt = xt - yt
        total = total + jnp.sum(jnp.sqrt(dt * dt + jnp.float32(eps)))

    return total / jnp.float32(n)


if __name__ == "__main__":
    key = jax.random.PRNGKey(0)
    eps = 1e-6

    # Aligned shape + an odd shape that exercises the masked/tail path.
    for idx, shape in enumerate([(2, 4, 16, 16), (2, 3, 17, 19)]):
        kx, ky = jax.random.split(jax.random.fold_in(key, idx))
        x = jax.random.normal(kx, shape, jnp.float32)
        y = jax.random.normal(ky, shape, jnp.float32)

        loss = jax.block_until_ready(charbonnier_loss(x, y, eps=eps))
        d = x - y
        ref = jnp.mean(jnp.sqrt(d * d + eps))
        assert bool(jnp.isfinite(loss)), loss
        assert jnp.allclose(loss, ref, rtol=1e-5, atol=1e-6), (loss, ref)

    print("KERNEL_OK")
</pallas_src>

<mosaic_0001>
module attributes {stable_mosaic.version = 11 : i64} {
  func.func @_charbonnier_kernel(%arg0: i32, %arg1: i32, %arg2: memref<16x128xf32, #tpu.memory_space<vmem>>, %arg3: memref<16x128xf32, #tpu.memory_space<vmem>>, %arg4: memref<8x128xf32, #tpu.memory_space<vmem>>, %arg5: memref<8x128xf32, #tpu.memory_space<vmem>>) attributes {dimension_semantics = [#tpu.dimension_semantics<parallel>, #tpu.dimension_semantics<arbitrary>], iteration_bounds = array<i64: 2, 1>, scalar_prefetch = 0 : i64, scratch_operands = 1 : i64, tpu.core_type = #tpu.core_type<tc>, window_params = [{transform_indices = @transform_0, window_bounds = array<i64: 16, 128>}, {transform_indices = @transform_1, window_bounds = array<i64: 16, 128>}, {transform_indices = @transform_2, window_bounds = array<i64: 8, 128>}]} {
    %c0_i32 = arith.constant 0 : i32
    %0 = arith.cmpi eq, %arg1, %c0_i32 : i32
    %1 = arith.extui %0 : i1 to i32
    %c0_i32_0 = arith.constant 0 : i32
    %2 = arith.cmpi ne, %1, %c0_i32_0 : i32
    scf.if %2 {
      %cst_13 = arith.constant 0.000000e+00 : f32
      %28 = vector.broadcast %cst_13 : f32 to vector<8x128xf32>
      %c0_14 = arith.constant 0 : index
      %c0_15 = arith.constant 0 : index
      %29 = vector.load %arg5[%c0_14, %c0_15] : memref<8x128xf32, #tpu.memory_space<vmem>>, vector<8x128xf32>
      tpu.vector_store %arg5[%c0_14, %c0_15], %28 {strides = array<i32>} : memref<8x128xf32, #tpu.memory_space<vmem>>, vector<8x128xf32>,
    } else {
    }
    %c1_i32 = arith.constant 1 : i32
    %3 = arith.muli %arg0, %c1_i32 : i32
    %4 = arith.addi %3, %arg1 : i32
    %c16_i32 = arith.constant 16 : i32
    %5 = arith.muli %4, %c16_i32 : i32
    %6 = tpu.iota {dimensions = array<i32: 0>} : vector<16x128xi32>
    %7 = vector.broadcast %5 : i32 to vector<16x128xi32>
    %8 = arith.addi %7, %6 : vector<16x128xi32>
    %c16_i32_1 = arith.constant 16 : i32
    %9 = vector.broadcast %c16_i32_1 : i32 to vector<16x128xi32>
    %10 = arith.cmpi slt, %8, %9 : vector<16x128xi32>
    %c0 = arith.constant 0 : index
    %c0_2 = arith.constant 0 : index
    %11 = vector.load %arg2[%c0, %c0_2] : memref<16x128xf32, #tpu.memory_space<vmem>>, vector<16x128xf32>
    %c0_3 = arith.constant 0 : index
    %c0_4 = arith.constant 0 : index
    %12 = vector.load %arg3[%c0_3, %c0_4] : memref<16x128xf32, #tpu.memory_space<vmem>>, vector<16x128xf32>
    %13 = arith.subf %11, %12 : vector<16x128xf32>
    %14 = arith.mulf %13, %13 : vector<16x128xf32>
    %cst = arith.constant 9.99999997E-7 : f32
    %15 = vector.broadcast %cst : f32 to vector<16x128xf32>
    %16 = arith.addf %14, %15 : vector<16x128xf32>
    %17 = math.sqrt %16 : vector<16x128xf32>
    %cst_5 = arith.constant 0.000000e+00 : f32
    %18 = vector.broadcast %cst_5 : f32 to vector<16x128xf32>
    %19 = arith.select %10, %17, %18 : vector<16x128xi1>, vector<16x128xf32>
    %c0_6 = arith.constant 0 : index
    %c0_7 = arith.constant 0 : index
    %20 = vector.load %arg5[%c0_6, %c0_7] : memref<8x128xf32, #tpu.memory_space<vmem>>, vector<8x128xf32>
    %21 = vector.shape_cast %19 : vector<16x128xf32> to vector<2x8x128xf32>
    %cst_8 = arith.constant dense<0.000000e+00> : vector<8x128xf32>
    %22 = vector.multi_reduction <add>, %21, %cst_8 [0] : vector<2x8x128xf32> to vector<8x128xf32>
    %23 = arith.addf %20, %22 : vector<8x128xf32>
    %c0_9 = arith.constant 0 : index
    %c0_10 = arith.constant 0 : index
    %24 = vector.load %arg5[%c0_9, %c0_10] : memref<8x128xf32, #tpu.memory_space<vmem>>, vector<8x128xf32>
    tpu.vector_store %arg5[%c0_9, %c0_10], %23 {strides = array<i32>} : memref<8x128xf32, #tpu.memory_space<vmem>>, vector<8x128xf32>,
    %c0_i32_11 = arith.constant 0 : i32
    %25 = arith.cmpi eq, %arg1, %c0_i32_11 : i32
    %26 = arith.extui %25 : i1 to i32
    %c0_i32_12 = arith.constant 0 : i32
    %27 = arith.cmpi ne, %26, %c0_i32_12 : i32
    scf.if %27 {
      %c0_13 = arith.constant 0 : index
      %c0_14 = arith.constant 0 : index
      %28 = vector.load %arg5[%c0_13, %c0_14] : memref<8x128xf32, #tpu.memory_space<vmem>>, vector<8x128xf32>
      %c0_15 = arith.constant 0 : index
      %c0_16 = arith.constant 0 : index
      %29 = vector.load %arg4[%c0_15, %c0_16] : memref<8x128xf32, #tpu.memory_space<vmem>>, vector<8x128xf32>
      tpu.vector_store %arg4[%c0_15, %c0_16], %28 {strides = array<i32>} : memref<8x128xf32, #tpu.memory_space<vmem>>, vector<8x128xf32>,
    } else {
    }
    return
  }
  func.func @transform_0(%arg0: i32, %arg1: i32) -> (i32, i32) {
    %c1_i32 = arith.constant 1 : i32
    %0 = arith.muli %arg0, %c1_i32 : i32
    %1 = arith.addi %0, %arg1 : i32
    %c0_i32 = arith.constant 0 : i32
    %2 = arith.minsi %1, %c0_i32 : i32
    %c0_i32_0 = arith.constant 0 : i32
    %c0_i32_1 = arith.constant 0 : i32
    return %2, %c0_i32_0 : i32, i32
  }
  func.func @transform_1(%arg0: i32, %arg1: i32) -> (i32, i32) {
    %c1_i32 = arith.constant 1 : i32
    %0 = arith.muli %arg0, %c1_i32 : i32
    %1 = arith.addi %0, %arg1 : i32
    %c0_i32 = arith.constant 0 : i32
    %2 = arith.minsi %1, %c0_i32 : i32
    %c0_i32_0 = arith.constant 0 : i32
    %c0_i32_1 = arith.constant 0 : i32
    return %2, %c0_i32_0 : i32, i32
  }
  func.func @transform_2(%arg0: i32, %arg1: i32) -> (i32, i32) {
    %c0_i32 = arith.constant 0 : i32
    %c0_i32_0 = arith.constant 0 : i32
    return %arg0, %c0_i32 : i32, i32
  }
}

</mosaic_0001>

<bundles_post_ra>
// kernel: charbonnier_loss.1
= control target key start
LH: loop header
LB: loop body
LE: loop exit
PB: predicated region body
PF: predicated region fallthrough
CT: control target
= control target key end

     0   :  { %s423_s9 = smov 0   ;;  %s425_s10 = smov 0   ;;  %s466_s0 = inlined_call_operand.vmem [shape: f32[16,128], index: 0, kind: input, shape index: {}]   ;;  %s467_s1 = inlined_call_operand.vmem [shape: f32[16,128], index: 1, kind: input, shape index: {}]   ;;  %s468_s2 = inlined_call_operand.vmem [shape: f32[16,128], index: 2, kind: output, shape index: {}]  }
   0x1   :  { %s427_s11 = smov 0  }
   0x2 LB: > { %s24_s12 = sadd.s32 1, %s402_s10  ;;  %p347_p0 = scmp.ge.s32.totalorder %s406_s11, 1  ;;  %s406_s11 = sphi %s427_s11, %s12_s11   ;;  %s402_s10 = sphi %s425_s10, %s470_s10   ;;  %s398_s9 = sphi %s423_s9, %s469_s9  }
   0x3   : > { %p26_p1 = scmp.ge.s32.totalorder %s24_s12, 2  ;;  %p160_p2 = scmp.lt.s32.totalorder %s406_s11, 3 }
   0x5   : > { %s472_s12 = smov (%p26_p1, %s24_s12), 0  ;;  %p161_p3 = pnand %p347_p0, %p160_p2 }
   0x6   : > { %p193_p4 = scmp.lt.s32.totalorder (!%p161_p3), %s398_s9, 0  ;;  %s353_s22 = sshll.u32 (!%p161_p3), %s398_s9, 4 }
   0x7   : > { %164 = sbr.rel (%p161_p3) target bundleno = 51 (0x33), region = 28  ;;  %p216_p6 = scmp.lt.s32.totalorder (!%p161_p3), %s398_s9, 1 }
   0xc   : > { %s194_s13 = scalar_select %p193_p4, %s398_s9, 0  ;;  %v227_v10 = vlaneseq  ;;  %v230_v13 = vstv %s353_s22 }
   0xd   : > { %s476_s9 = smov (!%p216_p6, %s398_s9), 1 }
   0xe   : > { %s348_s14 = sshll.u32 %s194_s13, 1  ;;  %v228_v11 = vshrl.u32 %v227_v10, 7  ;;  %s352_s23 = sshll.u32 %s476_s9, 3 }
   0xf   : > { %p196_p5 = scmp.lt.s32.totalorder %s348_s14, 1  ;;  %s219_s26 = scalar_lea.vmem %s468_s2, %s352_s23 }
  0x10   : > { %v229_v12 = vadd.s32 8, %v228_v11  ;;  %v231_v14 = vadd.s32 %v230_v13, %v228_v11 }
  0x11   : > { %s474_s14 = smov (!%p196_p5, %s348_s14), 1 }
  0x12   : > { %s349_s15 = sshll.u32 %s474_s14, 3  ;;  %v232_v15 = vadd.s32 %v230_v13, %v229_v12  ;;  %vm233_vm3 = vcmp.lt.s32.totalorder %v231_v14, 16 }
  0x13   : > { %s199_s18 = scalar_lea.vmem %s466_s0, %s349_s15  ;;  %s211_s21 = scalar_lea.vmem %s467_s1, %s349_s15 }
  0x14   : > { %v235_v0 = vld [vmem:[%s199_s18] sm:$0xff]  ;;  %v236_v1 = vld [vmem:[%s199_s18 + $0x8] sm:$0xff]  ;;  %vm234_vm5 = vcmp.lt.s32.totalorder %v232_v15, 16 }
  0x15   : > { %v237_v2 = vld [vmem:[%s211_s21] sm:$0xff]  ;;  %v238_v3 = vld [vmem:[%s211_s21 + $0x8] sm:$0xff] }
  0x16   : > { %v239_v4 = vsub.f32 %v235_v0, %v237_v2  ;;  %v240_v5 = vsub.f32 %v236_v1, %v238_v3 }
  0x18   : > { %v241_v6 = vmul.f32 %v239_v4, %v239_v4  ;;  %v242_v7 = vmul.f32 %v240_v5, %v240_v5 }
  0x1a   : > { %v243_v8 = vadd.f32 1e-06, %v241_v6  ;;  %v244_v9 = vadd.f32 1e-06, %v242_v7 }
  0x1c   : > { %380 = vrsqrt.f32 %v243_v8  ;;  %vm247_vm0 = vcmp.eq.f32.partialorder %v243_v8, inf  ;;  %v250_v17 = vand.u32 2147483648, %v243_v8  ;;  %vm249_vm1 = vcmp.eq.f32.partialorder %v243_v8, 0.0 }
  0x1d   : > { %382 = vrsqrt.f32 %v244_v9  ;;  %vm254_vm2 = vcmp.eq.f32.partialorder %v244_v9, inf  ;;  %v257_v20 = vand.u32 2147483648, %v244_v9  ;;  %vm256_vm4 = vcmp.eq.f32.partialorder %v244_v9, 0.0 }
  0x29   : > { %v381_v16 = vpop.eup %380 }
  0x2a   : > { %v383_v18 = vpop.eup %382  ;;  %v246_v19 = vmul.f32 %v381_v16, %v243_v8 }
  0x2b   : > { %v253_v21 = vmul.f32 %v383_v18, %v244_v9 }
  0x2c   : > { %v248_v22 = vsel %vm247_vm0, %v243_v8, %v246_v19 }
  0x2d   : > { %v251_v23 = vsel %vm249_vm1, %v250_v17, %v248_v22  ;;  %v255_v24 = vsel %vm254_vm2, %v244_v9, %v253_v21 }
  0x2e   : > { %v258_v25 = vsel %vm256_vm4, %v257_v20, %v255_v24  ;;  %v259_v26 = vsel %vm233_vm3, %v251_v23, 0.0 }
  0x2f   : > { %v260_v27 = vsel %vm234_vm5, %v258_v25, 0.0 }
  0x30   : > { %v262_v28 = vadd.f32 %v260_v27, %v259_v26 }
  0x32   : > { %269 = vst [vmem:[%s219_s26] sm:$0xff] %v262_v28 }
  0x33 PF: > { %s12_s11 = sadd.s32 1, %s406_s11   ;;  %s469_s9 = smov %s402_s10 }
  0x34   : > { %p9_p7 = scmp.ge.s32.totalorder %s12_s11, 4   ;;  %s470_s10 = smov %s472_s12 }
  0x36   :  { %11 = sbr.rel (!%p9_p7) target bundleno = 2 (0x2), region = 69 }

</bundles_post_ra>
